<compile_context>
chip_gen: v7x
topology: tpu7x:2x2x1
jax: 0.10.0
libtpu: 0.0.40
codegen_flags: <defaults>
</compile_context>

<pallas_src>
import jax
import jax.numpy as jnp
from jax.experimental import pallas as pl
from jax.experimental.pallas import tpu as pltpu


def _round_up(v: int, m: int) -> int:
    return ((v + m - 1) // m) * m


def _cdiv(a: int, b: int) -> int:
    return -(-a // b)


def _vmem_budgets():
    """Generation-aware (vmem_limit_bytes, weight_budget_bytes).

    v7x has 64 MiB VMEM per TensorCore, v5e/v6e have 128 MiB. Target ~75% of
    capacity and give the (double-buffered) weight at most half of that:
    ~24 MiB on v7x, ~48 MiB on v5e/v6e. The try/except only guards the
    capability query -- kernel compile/lowering errors are never caught here.
    """
    try:
        cap = int(pltpu.get_tpu_info().vmem_capacity_bytes)
    except Exception:
        cap = 64 * 1024 * 1024  # conservative fallback: v7x per-TC capacity
    vmem_limit = min((cap * 3) // 4, 100 * 1024 * 1024)
    return vmem_limit, vmem_limit // 2


def _pick_tn(hp: int, w_itemsize: int, weight_budget: int) -> int:
    """Output-column tile. Prefer a fully VMEM-resident weight (tn == Hp)."""
    if 2 * hp * hp * w_itemsize <= weight_budget:   # 2x: double-buffer accounting
        return hp
    # Streamed column tiles: multiples of 256 keep the 2x256^2 MXU N-dim full on
    # v6e/v7x; 128 only as a last resort (e.g. Hp not divisible by 256).
    for tn in (512, 256, 128):
        if hp % tn == 0 and 2 * hp * tn * w_itemsize <= weight_budget:
            return tn
    return 128


def _pick_tm(m, hp, tn, x_itemsize, w_itemsize, o_itemsize, vmem_limit):
    """Largest row tile (multiple of 8, <= 1024) whose total double-buffered
    footprint (x + weight + bias + out) fits under vmem_limit minus headroom,
    then re-balanced so row padding is < 8 rows per tile."""
    headroom = 4 * 1024 * 1024                         # compiler scratch, sems
    fixed = 2 * hp * tn * w_itemsize + 2 * tn * 4      # weight + bias buffers
    per_row = 2 * (hp * x_itemsize + tn * o_itemsize)  # x + out double buffers
    avail = max(vmem_limit - headroom - fixed, 8 * per_row)
    tm = min(1024, _round_up(m, 8), max(8, (avail // per_row) // 8 * 8))
    # Re-balance to minimize padded rows for ragged M (e.g. M=600 with tm=512
    # would otherwise pad to 1024 -> ~70% wasted flops/traffic).
    grid_m = _cdiv(m, tm)
    tm = _round_up(_cdiv(m, grid_m), 8)
    return tm, grid_m, grid_m * tm


def residual_linear_kernel(x_ref, w_ref, b_ref, o_ref):
    """One (tm, tn) output tile of: out = x + x @ w + b.

    x_ref: (tm, Hp)  activation rows, full contraction dim (also the residual)
    w_ref: (Hp, tn)  weight column tile (or the whole weight when resident)
    b_ref: (1,  tn)  bias column tile (f32)
    o_ref: (tm, tn)
    """
    tn = o_ref.shape[-1]
    # MXU matmul, f32 accumulation.
    y = jnp.dot(x_ref[...], w_ref[...], preferred_element_type=jnp.float32)
    # Residual sliced from the already-resident full-K x tile: no second x stream.
    col = pl.multiple_of(pl.program_id(1) * tn, 128)
    res = x_ref[:, pl.ds(col, tn)].astype(jnp.float32) + b_ref[...].astype(jnp.float32)
    o_ref[...] = (y + res).astype(o_ref.dtype)


def prepare_add_layer_params(w, b, *, use_bf16_matmul=True):
    """Pad/cast the Linear(H, H) params ONCE, outside the per-call hot path.

    w: (H_in, H_out) == PyTorch weight.T; b: (H_out,).
    Returns (w_p, b_p, H) with w_p: (Hp, Hp), b_p: (1, Hp), Hp = round_up(H, 128).
    """
    h_in, h_out = w.shape
    assert h_in == h_out, "AddLayer residual requires a square Linear (H -> H)"
    hp = _round_up(h_in, 128)
    if hp != h_in:
        w = jnp.pad(w, ((0, hp - h_in), (0, hp - h_out)))
        b = jnp.pad(b, (0, hp - h_out))
    w_p = w.astype(jnp.bfloat16) if use_bf16_matmul else w
    b_p = b.reshape(1, hp).astype(jnp.float32)
    return w_p, b_p, h_in


def add_layer_forward(x, w=None, b=None, *, use_bf16_matmul=True, prepared=None):
    """AddLayer(Linear): out = x + (x @ w + b), x: (..., H)."""
    if prepared is None:
        prepared = prepare_add_layer_params(w, b, use_bf16_matmul=use_bf16_matmul)
    w_p, b_p, h = prepared

    orig_shape = x.shape
    assert orig_shape[-1] == h, "hidden dim mismatch between x and the Linear params"
    m = 1
    for d in orig_shape[:-1]:
        m *= d
    hp = w_p.shape[0]
    out_dtype = x.dtype

    # MXU operand dtype: bf16 LHS iff the weight was prepared as bf16.
    x_dt = jnp.bfloat16 if w_p.dtype == jnp.bfloat16 else x.dtype
    x_b = jnp.dtype(x_dt).itemsize
    w_b = jnp.dtype(w_p.dtype).itemsize
    o_b = jnp.dtype(out_dtype).itemsize

    vmem_limit, weight_budget = _vmem_budgets()
    tn = _pick_tn(hp, w_b, weight_budget)
    tm, grid_m, mp = _pick_tm(m, hp, tn, x_b, w_b, o_b, vmem_limit)
    grid_n = hp // tn

    # Pad / cast x only when strictly necessary (each is a full activation pass).
    x2d = x.reshape(m, h)
    if x2d.dtype != x_dt:
        x2d = x2d.astype(x_dt)
    if (mp, hp) != (m, h):
        x2d = jnp.pad(x2d, ((0, mp - m), (0, hp - h)))

    # Megacore sharding: never duplicate the dominant HBM stream across cores.
    #   weight resident (grid_n == 1) -> shard rows (i)
    #   weight streamed (grid_n  > 1) -> shard weight columns (j); x (one pass)
    #                                    is cheap to duplicate.
    if grid_n == 1:
        dims = ("parallel", "arbitrary")
    else:
        dims = ("arbitrary", "parallel")

    grid_spec = pltpu.PrefetchScalarGridSpec(
        num_scalar_prefetch=0,
        # j innermost: the full-K x block index (i, 0) is constant across it, so
        # x stays VMEM-resident (a single HBM pass over x in total).
        grid=(grid_m, grid_n),
        in_specs=[
            pl.BlockSpec((tm, hp), lambda i, j: (i, 0)),  # x, full contraction dim
            pl.BlockSpec((hp, tn), lambda i, j: (0, j)),  # weight column tile
            pl.BlockSpec((1, tn), lambda i, j: (0, j)),   # bias column tile
        ],
        out_specs=pl.BlockSpec((tm, tn), lambda i, j: (i, j)),
    )

    w_hbm_bytes = hp * hp * w_b * (1 if grid_n == 1 else grid_m)
    out2d = pl.pallas_call(
        residual_linear_kernel,
        out_shape=jax.ShapeDtypeStruct((mp, hp), out_dtype),
        grid_spec=grid_spec,
        compiler_params=pltpu.CompilerParams(
            dimension_semantics=dims,
            vmem_limit_bytes=vmem_limit,
        ),
        cost_estimate=pl.CostEstimate(
            flops=2 * mp * hp * hp + 2 * mp * hp,
            transcendentals=0,
            bytes_accessed=mp * hp * (x_b + o_b) + w_hbm_bytes,
        ),
    )(x2d, w_p, b_p)

    if (mp, hp) != (m, h):
        out2d = out2d[:m, :h]
    return out2d.reshape(orig_shape)


if __name__ == "__main__":
    key = jax.random.PRNGKey(0)
    kx, kw, kb = jax.random.split(key, 3)

    B, S, H = 2, 8, 32
    x = jax.random.normal(kx, (B, S, H), dtype=jnp.float32)
    # Deterministic synthetic parameters for the wrapped Linear(H, H) layer,
    # stored as (H_in, H_out) -- i.e. PyTorch's W^T.
    w = jax.random.normal(kw, (H, H), dtype=jnp.float32) * 0.05
    b = jax.random.normal(kb, (H,), dtype=jnp.float32) * 0.05

    # Params are prepared once (pad + bf16 cast) outside the per-call hot path.
    prepared = prepare_add_layer_params(w, b, use_bf16_matmul=True)
    out = add_layer_forward(x, prepared=prepared)
    out = jax.block_until_ready(out)

    # Pure-JAX reference of AddLayer(Linear). bf16 MXU operands (and bf16
    # residual) with f32 accumulation introduce only a small quantization error.
    ref = x + (x @ w + b)
    assert out.shape == ref.shape
    err = float(jnp.max(jnp.abs(out - ref)))
    assert jnp.allclose(out, ref, atol=3e-2, rtol=3e-2), f"max abs err {err}"

    print("KERNEL_OK")
</pallas_src>

<mosaic_0001>
module attributes {stable_mosaic.version = 11 : i64} {
  func.func @residual_linear_kernel(%arg0: i32, %arg1: i32, %arg2: memref<16x128xbf16, #tpu.memory_space<vmem>>, %arg3: memref<128x128xbf16, #tpu.memory_space<vmem>>, %arg4: memref<1x128xf32, #tpu.memory_space<vmem>>, %arg5: memref<16x128xf32, #tpu.memory_space<vmem>>) attributes {dimension_semantics = [#tpu.dimension_semantics<parallel>, #tpu.dimension_semantics<arbitrary>], iteration_bounds = array<i64: 1, 1>, scalar_prefetch = 0 : i64, scratch_operands = 0 : i64, tpu.core_type = #tpu.core_type<tc>, window_params = [{transform_indices = @transform_0, window_bounds = array<i64: 16, 128>}, {transform_indices = @transform_1, window_bounds = array<i64: 128, 128>}, {transform_indices = @transform_2, window_bounds = array<i64: 1, 128>}, {transform_indices = @transform_3, window_bounds = array<i64: 16, 128>}]} {
    %c0 = arith.constant 0 : index
    %c0_0 = arith.constant 0 : index
    %0 = vector.load %arg2[%c0, %c0_0] : memref<16x128xbf16, #tpu.memory_space<vmem>>, vector<16x128xbf16>
    %c0_1 = arith.constant 0 : index
    %c0_2 = arith.constant 0 : index
    %1 = vector.load %arg3[%c0_1, %c0_2] : memref<128x128xbf16, #tpu.memory_space<vmem>>, vector<128x128xbf16>
    %cst = arith.constant dense<0.000000e+00> : vector<16x128xf32>
    %2 = tpu.matmul %0, %1, %cst {dimension_numbers = #tpu.dot_dimension_numbers<[1], [0], [0], [1], [0, 0, 1, 1], [], []>} : vector<16x128xbf16>, vector<128x128xbf16>, vector<16x128xf32> -> vector<16x128xf32>
    %c128_i32 = arith.constant 128 : i32
    %3 = arith.muli %arg1, %c128_i32 : i32
    %4 = tpu.assume_multiple %3, 128 : i32
    %c0_3 = arith.constant 0 : index
    %5 = arith.index_cast %4 : i32 to index
    %6 = vector.load %arg2[%c0_3, %5] : memref<16x128xbf16, #tpu.memory_space<vmem>>, vector<16x128xbf16>
    %7 = arith.extf %6 : vector<16x128xbf16> to vector<16x128xf32>
    %c0_4 = arith.constant 0 : index
    %c0_5 = arith.constant 0 : index
    %8 = vector.load %arg4[%c0_4, %c0_5] : memref<1x128xf32, #tpu.memory_space<vmem>>, vector<1x128xf32>
    %9 = vector.broadcast %8 : vector<1x128xf32> to vector<16x128xf32>
    %10 = arith.addf %7, %9 : vector<16x128xf32>
    %11 = arith.addf %2, %10 : vector<16x128xf32>
    %c0_6 = arith.constant 0 : index
    %c0_7 = arith.constant 0 : index
    %12 = vector.load %arg5[%c0_6, %c0_7] : memref<16x128xf32, #tpu.memory_space<vmem>>, vector<16x128xf32>
    tpu.vector_store %arg5[%c0_6, %c0_7], %11 {strides = array<i32>} : memref<16x128xf32, #tpu.memory_space<vmem>>, vector<16x128xf32>,
    return
  }
  func.func @transform_0(%arg0: i32, %arg1: i32) -> (i32, i32) {
    %c0_i32 = arith.constant 0 : i32
    %c0_i32_0 = arith.constant 0 : i32
    return %arg0, %c0_i32 : i32, i32
  }
  func.func @transform_1(%arg0: i32, %arg1: i32) -> (i32, i32) {
    %c0_i32 = arith.constant 0 : i32
    %c0_i32_0 = arith.constant 0 : i32
    return %c0_i32, %arg1 : i32, i32
  }
  func.func @transform_2(%arg0: i32, %arg1: i32) -> (i32, i32) {
    %c0_i32 = arith.constant 0 : i32
    %c0_i32_0 = arith.constant 0 : i32
    return %c0_i32, %arg1 : i32, i32
  }
  func.func @transform_3(%arg0: i32, %arg1: i32) -> (i32, i32) {
    %c0_i32 = arith.constant 0 : i32
    return %arg0, %arg1 : i32, i32
  }
}

</mosaic_0001>

<bundles_post_ra>
// kernel: tpu_custom_call.1
= control target key start
LH: loop header
LB: loop body
LE: loop exit
PB: predicated region body
PF: predicated region fallthrough
CT: control target
= control target key end

     0   :  { %8 = vsyncpa [#allocation3], 0  ;;  %s398_s0 = inlined_call_operand.hbm [shape: bf16[16,128], index: 0, kind: input, shape index: {}]   ;;  %s399_s1 = inlined_call_operand.hbm [shape: bf16[128,128], index: 1, kind: input, shape index: {}]   ;;  %s400_s2 = inlined_call_operand.vmem [shape: f32[1,128], index: 2, kind: input, shape index: {}]   ;;  %s401_s3 = inlined_call_operand.hbm [shape: f32[16,128], index: 3, kind: output, shape index: {}]  }
   0x1   :  { %9 = vsyncpa [#allocation6], 0 }
   0x2   :  { %10 = vsyncpa [#allocation4], 0  ;;  %s330_s12 = smov [#allocation2]   ;;  %s258_s16 = scalar_lea.hbm %s398_s0, 128 }
   0x3   :  { %s16_s13 = sshll.u32 %s330_s12, 4  ;;  %p259_p0 = scmp.ne.s32.totalorder %s398_s0, %s258_s16  ;;  %s17_s13 = int_to_ptr.vmem [resolvable:$true] %s16_s13 }
   0x4   :  { %p262_p1 = scmp.lt.u32.totalorder %s258_s16, %s398_s0 }
   0x6   :  { %p264_p2 = pnand %p262_p1, %p259_p0 }
   0x8   :  { %267 = shalt.err (!%p264_p2)
}
   0x9   :  { %s268_s21 = scalar_lea.vmem %s17_s13, 128  ;;  %p273_p4 = scmp.lt.s32.totalorder %s17_s13, %s17_s13 }
   0xa   :  { %p269_p3 = scmp.ne.s32.totalorder %s17_s13, %s268_s21  ;;  %p274_p5 = scmp.lt.s32.totalorder %s268_s21, %s268_s21 }
   0xc   :  { %p275_p6 = por %p274_p5, %p273_p4 }
   0xe   :  { %p276_p7 = pnand %p275_p6, %p269_p3 }
  0x10   :  { %279 = shalt.err (!%p276_p7)
}
  0x11   :  { %s331_s22 = smov 64   ;;  %s332_s23 = smov 4  }
  0x12   :  { %22 = dma.hbm_to_vmem [thread:$0]  %s398_s0, 128, %s17_s13, [#allocation3], %s331_s22, %s331_s22, %s332_s23  }
  0x13   :  { %s333_s26 = smov [#allocation5]   ;;  %s280_s30 = scalar_lea.hbm %s399_s1, 1024 }
  0x14   :  { %s28_s27 = sshll.u32 %s333_s26, 4  ;;  %p281_p8 = scmp.ne.s32.totalorder %s399_s1, %s280_s30  ;;  %s29_s27 = int_to_ptr.vmem [resolvable:$true] %s28_s27 }
  0x15   :  { %p284_p9 = scmp.lt.u32.totalorder %s280_s30, %s399_s1 }
  0x17   :  { %p286_p10 = pnand %p284_p9, %p281_p8 }
  0x19   :  { %289 = shalt.err (!%p286_p10)
}
  0x1a   :  { %s290_s8 = scalar_lea.vmem %s29_s27, 1024  ;;  %p295_p12 = scmp.lt.s32.totalorder %s29_s27, %s29_s27 }
  0x1b   :  { %p291_p11 = scmp.ne.s32.totalorder %s29_s27, %s290_s8  ;;  %p296_p13 = scmp.lt.s32.totalorder %s290_s8, %s290_s8 }
  0x1d   :  { %p297_p0 = por %p296_p13, %p295_p12 }
  0x1f   :  { %p298_p1 = pnand %p297_p0, %p291_p11 }
  0x21   :  { %301 = shalt.err (!%p298_p1)
}
  0x22   :  { %34 = dma.hbm_to_vmem [thread:$0]  %s399_s1, 1024, %s29_s27, [#allocation6], %s331_s22, %s331_s22, %s332_s23  }
  0x23   :  { %324 = dma.done.wait [#allocation3], 128  }
  0x24   :  { %325 = vsyncadd [#allocation3], 4294967168 }
  0x25   :  { %326 = dma.done.wait [#allocation6], 1024  }
  0x26   :  { %327 = vsyncadd [#allocation6], 4294966272  ;;  %v334_v0 = vmov 0.0   ;;  %vm335_vm0 = vmmov 0   ;;  %v249_v1 = vld [vmem:[#allocation5] sm:$0xff]   ;;  %v250_v2 = vld [vmem:[#allocation5 + $0x8] sm:$0xff]  }
  0x27   :  { %220 = vmatprep.subr.bf16.mxu0 %v334_v0  ;;  %236 = vmatprep.mubr.msk.bf16.mxu0 %vm335_vm0, %v334_v0  ;;  %v251_v3 = vld [vmem:[#allocation5 + $0x10] sm:$0xff]   ;;  %v252_v4 = vld [vmem:[#allocation5 + $0x18] sm:$0xff]   ;;  %v253_v5 = vld [vmem:[#allocation5 + $0x20] sm:$0xff]   ;;  %s336_s11 = smov [#allocation7]  }
  0x28   :  { %221 = vmatpush3.bf16.msra.mxu0 %v249_v1  ;;  %v254_v6 = vld [vmem:[#allocation5 + $0x28] sm:$0xff]   ;;  %v255_v7 = vld [vmem:[#allocation5 + $0x30] sm:$0xff]   ;;  %v256_v8 = vld [vmem:[#allocation5 + $0x38] sm:$0xff]   ;;  %s182_s12 = sshll.u32 %s336_s11, 4  ;;  %s183_s12 = int_to_ptr.vmem [resolvable:$true] %s182_s12 }
  0x29   :  { %222 = vmatprep.subr.bf16.mxu0 %v334_v0  ;;  %v257_v9 = vld [vmem:[#allocation2] sm:$0xff]   ;;  %s302_s13 = scalar_lea.vmem %s183_s12, 256  ;;  %p307_p3 = scmp.lt.s32.totalorder %s183_s12, %s183_s12 }
  0x2a   :  { %v208_v10 = vld [vmem:[#allocation2] sm:$0xff]   ;;  %p303_p2 = scmp.ne.s32.totalorder %s183_s12, %s302_s13  ;;  %p308_p4 = scmp.lt.s32.totalorder %s302_s13, %s302_s13 }
  0x2b   :  { %v209_v11 = vunpack.c.l.bf16 %v208_v10  ;;  %v197_v12 = vld [vmem:[%s400_s2] ss:$0 sm:$0xff]  ;;  %v210_v13 = vunpack.c.h.bf16 %v208_v10 }
  0x2c   :  { %223 = vmatpush3.bf16.msra.mxu0 %v250_v2  ;;  %p309_p5 = por %p308_p4, %p307_p3 }
  0x2d   :  { %224 = vmatprep.subr.bf16.mxu0 %v334_v0  ;;  %v78_v14 = vadd.f32 %v209_v11, %v197_v12  ;;  %v79_v15 = vadd.f32 %v210_v13, %v197_v12 }
  0x2e   :  { %p310_p6 = pnand %p309_p5, %p303_p2 }
  0x30   :  { %225 = vmatpush3.bf16.msra.mxu0 %v251_v3 }
  0x31   :  { %226 = vmatprep.subr.bf16.mxu0 %v334_v0 }
  0x34   :  { %227 = vmatpush3.bf16.msra.mxu0 %v252_v4 }
  0x35   :  { %228 = vmatprep.subr.bf16.mxu0 %v334_v0 }
  0x38   :  { %229 = vmatpush3.bf16.msra.mxu0 %v253_v5 }
  0x39   :  { %230 = vmatprep.subr.bf16.mxu0 %v334_v0 }
  0x3c   :  { %231 = vmatpush3.bf16.msra.mxu0 %v254_v6 }
  0x3d   :  { %232 = vmatprep.subr.bf16.mxu0 %v334_v0 }
  0x40   :  { %233 = vmatpush3.bf16.msra.mxu0 %v255_v7 }
  0x41   :  { %234 = vmatprep.subr.bf16.mxu0 %v334_v0 }
  0x44   :  { %235 = vmatpush3.bf16.msra.mxu0 %v256_v8 }
  0x47   :  { %237 = vmatmul.mubr.bf16.vlgmr.msra.gmra.mrb[0].mxu0 %v257_v9 }
 0x11a   :  { %v168_v16 = vpop.f32.mrb[0].mxu0 }
 0x11b   :  { %v169_v17 = vadd.f32 %v168_v16, %v78_v14  ;;  %v238_v18 = vpop.f32.mrb[1].mxu0 }
 0x11c   :  { %v171_v19 = vpop.f32.mrb[2].mxu0 }
 0x11d   :  { %175 = vst [vmem:[#allocation7] sm:$0xff] %v169_v17  ;;  %v172_v20 = vadd.f32 %v171_v19, %v79_v15  ;;  %v239_v21 = vpop.f32.mrb[3].mxu0 }
 0x11f   :  { %176 = vst [vmem:[#allocation7 + $0x8] sm:$0xff] %v172_v20 }
 0x120   :  { %313 = shalt.err (!%p310_p6)
}
 0x121   :  { %s314_s15 = scalar_lea.hbm %s401_s3, 256 }
 0x122   :  { %p315_p7 = scmp.ne.s32.totalorder %s401_s3, %s314_s15  ;;  %p318_p8 = scmp.lt.u32.totalorder %s314_s15, %s401_s3 }
 0x124   :  { %p320_p9 = pnand %p318_p8, %p315_p7 }
 0x126   :  { %323 = shalt.err (!%p320_p9)
}
 0x127   :  { %s337_s20 = smov 128   ;;  %s338_s21 = smov 8  }
 0x128   :  { %188 = dma.vmem_to_hbm [thread:$0]  %s183_s12, 256, %s401_s3, [#allocation4], %s337_s20, %s337_s20, %s338_s21  }
 0x129   :  { %328 = dma.done.wait [#allocation4], 256  }
 0x12a   :  { %329 = vsyncadd [#allocation4], 4294967040 }
 0x12b   :  { %192 = vsyncpa [#allocation3], 1 }
 0x12c   :  { %193 = vsyncpa [#allocation6], 1 }
 0x12d   :  { %194 = vsyncpa [#allocation4], 1 }

</bundles_post_ra>
